<compile_context>
chip_gen: v7x
topology: tpu7x:2x2x1
jax: 0.10.0
libtpu: 0.0.40
codegen_flags: <defaults>
</compile_context>

<pallas_src>
import jax
import jax.numpy as jnp
from jax.experimental import pallas as pl
from jax.experimental.pallas import tpu as pltpu


def binary_classifier_kernel(x_ref, wb_ref, o_ref):
    # x_ref:  (2, TB) f32 in VMEM (batch on lanes)
    # wb_ref: (3,)    f32 in SMEM -> [w0, w1, b]
    # o_ref:  (1, TB) f32 in VMEM
    w0 = wb_ref[0]
    w1 = wb_ref[1]
    b = wb_ref[2]
    # Pure VPU: z = w0*x0 + w1*x1 + b; sigmoid's exp/recip run on the EUP.
    z = x_ref[0:1, :] * w0 + x_ref[1:2, :] * w1 + b
    o_ref[...] = jax.nn.sigmoid(z)


def binary_classifier(x, weight, bias, *, tb=8192):
    """x: (B, 2); weight: (1, 2) [PyTorch nn.Linear layout]; bias: (1,).

    Returns (B, 1) = sigmoid(x @ weight.T + bias), matching the PyTorch module.
    """
    B, F_in = x.shape
    assert F_in == 2, "BinaryClassifier is nn.Linear(2, 1)"
    assert weight.shape == (1, F_in) and bias.shape == (1,)

    # Lane-aligned batch tile: multiple of 128, no larger than the padded batch.
    bp_min = pl.cdiv(B, 128) * 128
    tb = max(128, (min(tb, bp_min) // 128) * 128)
    bp = pl.cdiv(B, tb) * tb  # padded batch (multiple of tb)

    # Layout plumbing in the wrapper: batch onto lanes + zero-pad the tail.
    x_t = jnp.pad(x.astype(jnp.float32).T, ((0, 0), (0, bp - B)))   # (2, Bp)
    wb = jnp.concatenate(
        [weight.astype(jnp.float32).reshape(F_in),
         bias.astype(jnp.float32)]
    )                                                               # (3,) -> SMEM

    out = pl.pallas_call(
        binary_classifier_kernel,
        out_shape=jax.ShapeDtypeStruct((1, bp), jnp.float32),
        grid=(bp // tb,),
        in_specs=[
            pl.BlockSpec((F_in, tb), lambda i: (0, i)),
            pl.BlockSpec(memory_space=pltpu.MemorySpace.SMEM),
        ],
        out_specs=pl.BlockSpec((1, tb), lambda i: (0, i)),
        compiler_params=pltpu.CompilerParams(
            dimension_semantics=("parallel",),
        ),
    )(x_t, wb)

    # Strip padding; return in the PyTorch (B, 1) shape.
    return out[0, :B].reshape(B, 1)


if __name__ == "__main__":
    key = jax.random.PRNGKey(0)
    kx, kw, kb = jax.random.split(key, 3)

    F_in, F_out = 2, 1
    # Deterministic params mimicking nn.Linear(2, 1) init:
    # uniform(-1/sqrt(fan_in), 1/sqrt(fan_in))
    bound = 1.0 / jnp.sqrt(jnp.float32(F_in))
    weight = jax.random.uniform(kw, (F_out, F_in), jnp.float32, -bound, bound)
    bias = jax.random.uniform(kb, (F_out,), jnp.float32, -bound, bound)

    ok = True
    # Small batch (typical module use), a multi-of-128 batch, and a ragged
    # batch that exercises the tail-padding path.
    for B in (8, 1024, 300):
        xb = jax.random.normal(jax.random.fold_in(kx, B), (B, F_in), jnp.float32)
        out = binary_classifier(xb, weight, bias)
        jax.block_until_ready(out)
        ref = jax.nn.sigmoid(xb @ weight.T + bias)
        ok = ok and out.shape == (B, 1) and bool(jnp.allclose(out, ref, atol=1e-6))

    assert ok
    print("KERNEL_OK")
</pallas_src>

<mosaic_0001>
module attributes {stable_mosaic.version = 11 : i64} {
  func.func @binary_classifier_kernel(%arg0: i32, %arg1: memref<2x128xf32, #tpu.memory_space<vmem>>, %arg2: memref<3xf32, #tpu.memory_space<smem>>, %arg3: memref<1x128xf32, #tpu.memory_space<vmem>>) attributes {dimension_semantics = [#tpu.dimension_semantics<parallel>], iteration_bounds = array<i64: 1>, scalar_prefetch = 0 : i64, scratch_operands = 0 : i64, tpu.core_type = #tpu.core_type<tc>, window_params = [{transform_indices = @transform_0, window_bounds = array<i64: 2, 128>}, {transform_indices = @transform_1, window_bounds = array<i64: 3>}, {transform_indices = @transform_2, window_bounds = array<i64: 1, 128>}]} {
    %c0 = arith.constant 0 : index
    %0 = memref.load %arg2[%c0] : memref<3xf32, #tpu.memory_space<smem>>
    %c1 = arith.constant 1 : index
    %1 = memref.load %arg2[%c1] : memref<3xf32, #tpu.memory_space<smem>>
    %c2 = arith.constant 2 : index
    %2 = memref.load %arg2[%c2] : memref<3xf32, #tpu.memory_space<smem>>
    %c0_0 = arith.constant 0 : index
    %c0_1 = arith.constant 0 : index
    %3 = vector.load %arg1[%c0_0, %c0_1] : memref<2x128xf32, #tpu.memory_space<vmem>>, vector<1x128xf32>
    %4 = vector.broadcast %0 : f32 to vector<1x128xf32>
    %5 = arith.mulf %3, %4 : vector<1x128xf32>
    %c1_2 = arith.constant 1 : index
    %c0_3 = arith.constant 0 : index
    %6 = vector.load %arg1[%c1_2, %c0_3] : memref<2x128xf32, #tpu.memory_space<vmem>>, vector<1x128xf32>
    %7 = vector.broadcast %1 : f32 to vector<1x128xf32>
    %8 = arith.mulf %6, %7 : vector<1x128xf32>
    %9 = arith.addf %5, %8 : vector<1x128xf32>
    %10 = vector.broadcast %2 : f32 to vector<1x128xf32>
    %11 = arith.addf %9, %10 : vector<1x128xf32>
    %12 = arith.negf %11 : vector<1x128xf32>
    %13 = math.exp %12 : vector<1x128xf32>
    %cst = arith.constant 1.000000e+00 : f32
    %14 = vector.broadcast %cst : f32 to vector<1x128xf32>
    %15 = arith.addf %14, %13 : vector<1x128xf32>
    %16 = arith.divf %14, %15 : vector<1x128xf32>
    %c0_4 = arith.constant 0 : index
    %c0_5 = arith.constant 0 : index
    %17 = vector.load %arg3[%c0_4, %c0_5] : memref<1x128xf32, #tpu.memory_space<vmem>>, vector<1x128xf32>
    tpu.vector_store %arg3[%c0_4, %c0_5], %16 {strides = array<i32>} : memref<1x128xf32, #tpu.memory_space<vmem>>, vector<1x128xf32>,
    return
  }
  func.func @transform_0(%arg0: i32) -> (i32, i32) {
    %c0_i32 = arith.constant 0 : i32
    %c0_i32_0 = arith.constant 0 : i32
    return %c0_i32, %arg0 : i32, i32
  }
  func.func @transform_1(%arg0: i32) -> i32 {
    %c0_i32 = arith.constant 0 : i32
    %c0_i32_0 = arith.constant 0 : i32
    return %c0_i32 : i32
  }
  func.func @transform_2(%arg0: i32) -> (i32, i32) {
    %c0_i32 = arith.constant 0 : i32
    %c0_i32_0 = arith.constant 0 : i32
    return %c0_i32, %arg0 : i32, i32
  }
}

</mosaic_0001>

<bundles_post_ra>
// kernel: tpu_custom_call.1
= control target key start
LH: loop header
LB: loop body
LE: loop exit
PB: predicated region body
PF: predicated region fallthrough
CT: control target
= control target key end

     0   :  { %7 = vsyncpa [#allocation3], 0  ;;  %s189_s0 = inlined_call_operand.hbm [shape: f32[2,128], index: 0, kind: input, shape index: {}]   ;;  %s190_s1 = inlined_call_operand.vmem [shape: f32[3], index: 1, kind: input, shape index: {}]   ;;  %s191_s2 = inlined_call_operand.hbm [shape: f32[1,128], index: 2, kind: output, shape index: {}]  }
   0x1   :  { %8 = vsyncpa [#allocation5], 0 }
   0x2   :  { %9 = vsyncpa [#allocation4], 0  ;;  %s26_s11 = sshll.u32 %s190_s1, 4  ;;  %s144_s12 = smov [#allocation2]   ;;  %s27_s11 = int_to_ptr.vmem [resolvable:$true] %s26_s11 }
   0x3   :  { %s16_s13 = sshll.u32 %s144_s12, 4  ;;  %s82_s16 = scalar_lea.hbm %s189_s0, 32  ;;  %s17_s13 = int_to_ptr.vmem [resolvable:$true] %s16_s13 }
   0x4   :  { %p83_p0 = scmp.ne.s32.totalorder %s189_s0, %s82_s16  ;;  %p86_p1 = scmp.lt.u32.totalorder %s82_s16, %s189_s0 }
   0x6   :  { %p88_p2 = pnand %p86_p1, %p83_p0 }
   0x8   :  { %91 = shalt.err (!%p88_p2)
}
   0x9   :  { %s92_s21 = scalar_lea.vmem %s17_s13, 32  ;;  %p97_p4 = scmp.lt.s32.totalorder %s17_s13, %s17_s13 }
   0xa   :  { %p93_p3 = scmp.ne.s32.totalorder %s17_s13, %s92_s21  ;;  %p98_p5 = scmp.lt.s32.totalorder %s92_s21, %s92_s21 }
   0xc   :  { %p99_p6 = por %p98_p5, %p97_p4 }
   0xe   :  { %p100_p7 = pnand %p99_p6, %p93_p3 }
  0x10   :  { %103 = shalt.err (!%p100_p7)
}
  0x11   :  { %19 = dma.hbm_to_vmem [thread:$0]  %s189_s0, 32, %s17_s13, [#allocation3]  }
  0x12   :  { %s104_s23 = scalar_lea.vmem %s27_s11, 16  ;;  %p109_p9 = scmp.lt.s32.totalorder %s27_s11, %s27_s11 }
  0x13   :  { %p105_p8 = scmp.ne.s32.totalorder %s27_s11, %s104_s23  ;;  %p110_p10 = scmp.lt.s32.totalorder %s104_s23, %s104_s23 }
  0x15   :  { %p111_p11 = por %p110_p10, %p109_p9 }
  0x17   :  { %p112_p12 = pnand %p111_p11, %p105_p8 }
  0x19   :  { %115 = shalt.err (!%p112_p12)
}
  0x1a   :  { %s145_s24 = smov [#allocation6]  }
  0x1b   :  { %29 = dma.vmem_to_smem %s27_s11, 16, %s145_s24, [#allocation5]  }
  0x1c   :  { %138 = dma.done.wait [#allocation3], 32  }
  0x1d   :  { %139 = vsyncadd [#allocation3], 4294967264 }
  0x1e   :  { %140 = dma.done.wait [#allocation5], 16  }
  0x1f   :  { %141 = vsyncadd [#allocation5], 4294967280 }
  0x20   :  { %36 = sfence }
  0x21   :  { %s37_s25 = sld [smem:[#allocation6]]  ;;  %s72_s26 = sld [smem:[#allocation6 + $0x1]]  ;;  %v40_v0 = vld [vmem:[#allocation2] sm:$0x1]  ;;  %v43_v1 = vld [vmem:[#allocation2 + $0x1] sm:$0x1] }
  0x22   :  { %s73_s27 = sld [smem:[#allocation6 + $0x2]]  ;;  %s146_s0 = smov [#allocation7]  }
  0x23   :  { %s62_s28 = sshll.u32 %s146_s0, 4  ;;  %s63_s28 = int_to_ptr.vmem [resolvable:$true] %s62_s28 }
  0x24   :  { %s116_s29 = scalar_lea.vmem %s63_s28, 16  ;;  %s120_s30 = scalar_lea.vmem %s63_s28, 32 }
  0x25   :  { %p117_p13 = scmp.ne.s32.totalorder %s63_s28, %s116_s29  ;;  %p121_p0 = scmp.lt.s32.totalorder %s63_s28, %s63_s28 }
  0x26   :  { %p122_p1 = scmp.lt.s32.totalorder %s120_s30, %s116_s29 }
  0x27   :  { %v41_v2 = vstv %s37_s25  ;;  %v44_v3 = vstv %s72_s26 }
  0x28   :  { %v42_v4 = vmul.f32 %v41_v2, %v40_v0  ;;  %v45_v5 = vmul.f32 %v44_v3, %v43_v1  ;;  %v47_v6 = vstv %s73_s27  ;;  %p123_p2 = por %p122_p1, %p121_p0 }
  0x2a   :  { %v46_v7 = vadd.f32 %v45_v5, %v42_v4  ;;  %p124_p3 = pnand %p123_p2, %p117_p13 }
  0x2c   :  { %v48_v8 = vadd.f32 %v47_v6, %v46_v7 }
  0x2e   :  { %v74_v9 = vmul.f32 -1.442695, %v48_v8 }
  0x30   :  { %78 = vpow2.f32 %v74_v9 }
  0x3a   :  { %v79_v10 = vpop.eup %78 }
  0x3b   :  { %v52_v11 = vadd.f32 1.0, %v79_v10 }
  0x3d   :  { %80 = vrcp.f32 %v52_v11 }
  0x47   :  { %v81_v12 = vpop.eup %80 }
  0x48   :  { %55 = vst [vmem:[#allocation7] sm:$0x1] %v81_v12 }
  0x49   :  { %127 = shalt.err (!%p124_p3)
}
  0x4a   :  { %s128_s5 = scalar_lea.hbm %s191_s2, 16 }
  0x4b   :  { %p129_p4 = scmp.ne.s32.totalorder %s191_s2, %s128_s5  ;;  %p132_p5 = scmp.lt.u32.totalorder %s128_s5, %s191_s2 }
  0x4d   :  { %p134_p6 = pnand %p132_p5, %p129_p4 }
  0x4f   :  { %137 = shalt.err (!%p134_p6)
}
  0x50   :  { %65 = dma.vmem_to_hbm [thread:$0]  %s63_s28, 16, %s191_s2, [#allocation4]  }
  0x51   :  { %142 = dma.done.wait [#allocation4], 16  }
  0x52   :  { %143 = vsyncadd [#allocation4], 4294967280 }
  0x53   :  { %69 = vsyncpa [#allocation3], 1 }
  0x54   :  { %70 = vsyncpa [#allocation4], 1 }
  0x55   :  { %71 = vsyncpa [#allocation5], 1 }

</bundles_post_ra>
